<compile_context>
chip_gen: v6e
topology: v6e:2x2x1
jax: 0.10.0
libtpu: 0.0.40
codegen_flags: <defaults>
</compile_context>

<pallas_src>
import jax
import jax.numpy as jnp
from jax.experimental import pallas as pl
from jax.experimental.pallas import tpu as pltpu


def _round_up(x: int, m: int) -> int:
    return ((x + m - 1) // m) * m


def _cdiv(a: int, b: int) -> int:
    return (a + b - 1) // b


# -----------------------------------------------------------------------------
# Pallas kernel: fused (encoder MLP + feature projection + mask) on a row tile.
# -----------------------------------------------------------------------------
def _graph_layer_kernel(
    feat_ref,    # (TM, F)          padded_feature rows, original dtype (cast in-kernel)
    keep_ref,    # (TM, 128)        bf16; only lane 0 meaningful (1 = keep, 0 = pad)
    w_cat_ref,   # (F, 2*D_pad)     bf16  [W_in | W_feat]
    b_cat_ref,   # (1, 2*D_pad)     f32   [b_in | b_feat]
    w_out_ref,   # (D_pad, D_pad)   bf16
    b_out_ref,   # (1, D_pad)       f32
    x_out_ref,   # (TM, D_pad)      out_dtype  graph_encoder output  ('memory' chunk)
    pf_out_ref,  # (TM, D_pad)      out_dtype  masked process_batch  ('tgt' chunk)
):
    d_pad = w_out_ref.shape[0]

    feat = feat_ref[...].astype(jnp.bfloat16)                 # in-kernel cast, no HBM pass

    # One MXU push for both shared-LHS projections (N = 2*D_pad, lane dense).
    hp = jnp.dot(feat, w_cat_ref[...], preferred_element_type=jnp.float32)
    hp = hp + b_cat_ref[...]                                  # (TM, 2*D_pad) f32

    # ---- process_batch + masked_fill: store first to shrink live f32 data ----
    keep = keep_ref[...][:, :1].astype(jnp.float32)           # (TM, 1) lane-broadcast
    pf_out_ref[...] = (hp[:, d_pad:] * keep).astype(pf_out_ref.dtype)

    # ---- graph_encoder: gelu (f32 -> EUP) + second matmul ---------------------
    h = jax.nn.gelu(hp[:, :d_pad])
    x = jnp.dot(h.astype(w_out_ref.dtype), w_out_ref[...],
                preferred_element_type=jnp.float32)
    x_out_ref[...] = (x + b_out_ref[...]).astype(x_out_ref.dtype)


# -----------------------------------------------------------------------------
# One-time parameter packing (hoisted out of the per-call path).
# -----------------------------------------------------------------------------
def pack_graph_layer_params(params):
    F, D = params["w_in"].shape
    D_pad = _round_up(D, 128)

    def pad_cols(w):
        return jnp.pad(w, ((0, 0), (0, D_pad - D)))

    w_cat = jnp.concatenate(
        [pad_cols(params["w_in"]), pad_cols(params["w_feat"])], axis=1
    ).astype(jnp.bfloat16)                                     # (F, 2*D_pad)
    b_cat = jnp.concatenate(
        [pad_cols(params["b_in"]), pad_cols(params["b_feat"])], axis=1
    ).astype(jnp.float32)                                      # (1, 2*D_pad)
    w_out = jnp.pad(params["w_out"],
                    ((0, D_pad - D), (0, D_pad - D))).astype(jnp.bfloat16)
    b_out = pad_cols(params["b_out"]).astype(jnp.float32)
    return {"w_cat": w_cat, "b_cat": b_cat, "w_out": w_out, "b_out": b_out,
            "feat_dim": F, "hidden_dim": D, "hidden_pad": D_pad}


def _pick_row_tiling(rows: int, tm_cap: int):
    rows8 = _round_up(rows, 8)
    # >=2 grid steps when rows allow (v7x has 2 TensorCores; 'parallel' only helps
    # with multiple steps) and a tight TM so the last tile isn't mostly padding.
    min_tiles = 2 if rows8 >= 16 else 1
    n_tiles = max(_cdiv(rows8, tm_cap), min_tiles)
    tm = _round_up(_cdiv(rows8, n_tiles), 8)
    n_tiles = _cdiv(rows8, tm)
    return tm, tm * n_tiles, n_tiles


# -----------------------------------------------------------------------------
# Wrapper: runs the fused GraphLayer hot path. Returns (x_, masked_padded_feature).
# -----------------------------------------------------------------------------
def graph_layer_pallas(padded_feature, padding_mask, packed, *, tm_cap=512):
    B, T, F = padded_feature.shape
    assert F == packed["feat_dim"]
    D, D_pad = packed["hidden_dim"], packed["hidden_pad"]
    out_dtype = padded_feature.dtype

    rows = B * T
    TM, rows_pad, n_tiles = _pick_row_tiling(rows, tm_cap)

    # Row-major flatten; feat keeps its dtype and unpadded F (cast to bf16 in-kernel).
    feat = padded_feature.reshape(rows, F)
    keep = (1.0 - padding_mask.reshape(rows, 1).astype(jnp.float32)).astype(jnp.bfloat16)
    if rows_pad != rows:
        feat = jnp.pad(feat, ((0, rows_pad - rows), (0, 0)))
        keep = jnp.pad(keep, ((0, rows_pad - rows), (0, 0)))
    keep = jnp.pad(keep, ((0, 0), (0, 127)))   # 128-lane slab; only lane 0 is read

    inv = lambda shape: pl.BlockSpec(shape, lambda i: (0, 0))   # grid-invariant (resident)

    # TODO(synk): on v7x, mark the grid-invariant weight specs with
    # pipeline_mode=pl.Buffered(1) (single-buffer resident weights) and consider fp8
    # for the first matmul once accuracy is validated.
    out_x, out_pf = pl.pallas_call(
        _graph_layer_kernel,
        out_shape=(jax.ShapeDtypeStruct((rows_pad, D_pad), out_dtype),
                   jax.ShapeDtypeStruct((rows_pad, D_pad), out_dtype)),
        grid_spec=pltpu.PrefetchScalarGridSpec(
            num_scalar_prefetch=0,
            grid=(n_tiles,),
            in_specs=[
                pl.BlockSpec((TM, F), lambda i: (i, 0)),     # feature rows (full F)
                pl.BlockSpec((TM, 128), lambda i: (i, 0)),   # keep-mask rows
                inv((F, 2 * D_pad)),                         # [W_in | W_feat]
                inv((1, 2 * D_pad)),                         # [b_in | b_feat]
                inv((D_pad, D_pad)),                         # W_out
                inv((1, D_pad)),                             # b_out
            ],
            out_specs=[
                pl.BlockSpec((TM, D_pad), lambda i: (i, 0)),
                pl.BlockSpec((TM, D_pad), lambda i: (i, 0)),
            ],
        ),
        compiler_params=pltpu.CompilerParams(
            dimension_semantics=("parallel",),        # independent row tiles
            vmem_limit_bytes=48 * 1024 * 1024,        # raises v5e default; safe on v7x
        ),
    )(feat, keep, packed["w_cat"], packed["b_cat"], packed["w_out"], packed["b_out"])

    x_ = out_x[:rows, :D].reshape(B, T, D)
    pf = out_pf[:rows, :D].reshape(B, T, D)
    return x_, pf


# -----------------------------------------------------------------------------
# GraphLayer.forward glue (concat with existing 'memory' / 'tgt' kwargs).
# -----------------------------------------------------------------------------
def graph_layer_forward(packed_params, **kwargs):
    padded_feature = kwargs.get("padded_feature", None)
    padding_mask = kwargs.get("padding_mask", None)

    # batch.has_graph check
    if padded_feature is None or padding_mask is None:
        return kwargs

    x_, tgt_feat = graph_layer_pallas(padded_feature, padding_mask, packed_params)

    out = dict(kwargs)
    if "memory" in out and out["memory"] is not None:
        out["memory"] = jnp.concatenate([out["memory"], x_], axis=1)
    else:
        out["memory"] = x_

    if "tgt" in out and out["tgt"] is not None:
        out["tgt"] = jnp.concatenate([out["tgt"], tgt_feat], axis=1)
    else:
        out["tgt"] = tgt_feat
    return out


# -----------------------------------------------------------------------------
# Deterministic parameter init + pure-JAX reference for correctness check.
# -----------------------------------------------------------------------------
def init_params(key, feat_dim, hidden_dim):
    k1, k2, k3 = jax.random.split(key, 3)
    s_in = 1.0 / jnp.sqrt(jnp.float32(feat_dim))
    s_h = 1.0 / jnp.sqrt(jnp.float32(hidden_dim))
    return {
        "w_in":   jax.random.normal(k1, (feat_dim, hidden_dim), jnp.float32) * s_in,
        "b_in":   jnp.zeros((1, hidden_dim), jnp.float32),
        "w_out":  jax.random.normal(k2, (hidden_dim, hidden_dim), jnp.float32) * s_h,
        "b_out":  jnp.zeros((1, hidden_dim), jnp.float32),
        "w_feat": jax.random.normal(k3, (feat_dim, hidden_dim), jnp.float32) * s_in,
        "b_feat": jnp.zeros((1, hidden_dim), jnp.float32),
    }


def reference_forward(padded_feature, padding_mask, params):
    h = jnp.dot(padded_feature, params["w_in"]) + params["b_in"]
    h = jax.nn.gelu(h)
    x_ = jnp.dot(h, params["w_out"]) + params["b_out"]
    pf = jnp.dot(padded_feature, params["w_feat"]) + params["b_feat"]
    pf = jnp.where(padding_mask[..., None] > 0.5, 0.0, pf)
    return x_, pf


if __name__ == "__main__":
    B, T, F, D = 2, 8, 32, 32          # batch, padded graph tokens, feature, hidden
    T_prev = 8                          # pre-existing memory/tgt sequence length

    key = jax.random.PRNGKey(0)
    kp, kf, kmem, ktgt = jax.random.split(key, 4)

    params = init_params(kp, F, D)
    packed = pack_graph_layer_params(params)   # one-time packing (not per call)

    padded_feature = jax.random.normal(kf, (B, T, F), jnp.float32)
    # padding mask: last 2 tokens of each sequence are padding (1 = pad)
    padding_mask = (jnp.arange(T)[None, :] >= (T - 2)).astype(jnp.float32)
    padding_mask = jnp.broadcast_to(padding_mask, (B, T))

    kwargs = {
        "padded_feature": padded_feature,
        "padding_mask": padding_mask,
        # exercise the "concat to existing memory/tgt" branch
        "memory": jax.random.normal(kmem, (B, T_prev, D), jnp.float32),
        "tgt": jax.random.normal(ktgt, (B, T_prev, D), jnp.float32),
    }

    out = graph_layer_forward(packed, **kwargs)
    jax.block_until_ready(out["memory"])
    jax.block_until_ready(out["tgt"])

    assert out["memory"].shape == (B, T_prev + T, D)
    assert out["tgt"].shape == (B, T_prev + T, D)

    # Numerical check vs pure-JAX reference (bf16 matmuls -> loose tolerance).
    x_ref, pf_ref = reference_forward(padded_feature, padding_mask, params)
    mem_k = out["memory"][:, T_prev:, :]
    tgt_k = out["tgt"][:, T_prev:, :]
    assert bool(jnp.allclose(mem_k, x_ref, atol=5e-2, rtol=5e-2))
    assert bool(jnp.allclose(tgt_k, pf_ref, atol=5e-2, rtol=5e-2))
    # padded rows of the appended tgt chunk must be exactly zero
    assert float(jnp.abs(tgt_k[:, -2:, :]).max()) == 0.0

    print("KERNEL_OK")
</pallas_src>

<mosaic_0001>
module attributes {stable_mosaic.version = 11 : i64} {
  func.func @_graph_layer_kernel(%arg0: i32, %arg1: memref<8x32xf32, #tpu.memory_space<vmem>>, %arg2: memref<8x128xbf16, #tpu.memory_space<vmem>>, %arg3: memref<32x256xbf16, #tpu.memory_space<vmem>>, %arg4: memref<1x256xf32, #tpu.memory_space<vmem>>, %arg5: memref<128x128xbf16, #tpu.memory_space<vmem>>, %arg6: memref<1x128xf32, #tpu.memory_space<vmem>>, %arg7: memref<8x128xf32, #tpu.memory_space<vmem>>, %arg8: memref<8x128xf32, #tpu.memory_space<vmem>>) attributes {dimension_semantics = [#tpu.dimension_semantics<parallel>], iteration_bounds = array<i64: 2>, scalar_prefetch = 0 : i64, scratch_operands = 0 : i64, tpu.core_type = #tpu.core_type<tc>, window_params = [{transform_indices = @transform_0, window_bounds = array<i64: 8, 32>}, {transform_indices = @transform_1, window_bounds = array<i64: 8, 128>}, {pipeline_mode = #tpu.pipeline_mode<synchronous>, transform_indices = @transform_2, window_bounds = array<i64: 32, 256>}, {pipeline_mode = #tpu.pipeline_mode<synchronous>, transform_indices = @transform_3, window_bounds = array<i64: 1, 256>}, {pipeline_mode = #tpu.pipeline_mode<synchronous>, transform_indices = @transform_4, window_bounds = array<i64: 128, 128>}, {pipeline_mode = #tpu.pipeline_mode<synchronous>, transform_indices = @transform_5, window_bounds = array<i64: 1, 128>}, {transform_indices = @transform_6, window_bounds = array<i64: 8, 128>}, {transform_indices = @transform_7, window_bounds = array<i64: 8, 128>}]} {
    %c0 = arith.constant 0 : index
    %c0_0 = arith.constant 0 : index
    %0 = vector.load %arg1[%c0, %c0_0] : memref<8x32xf32, #tpu.memory_space<vmem>>, vector<8x32xf32>
    %1 = arith.truncf %0 : vector<8x32xf32> to vector<8x32xbf16>
    %c0_1 = arith.constant 0 : index
    %c0_2 = arith.constant 0 : index
    %2 = vector.load %arg3[%c0_1, %c0_2] : memref<32x256xbf16, #tpu.memory_space<vmem>>, vector<32x256xbf16>
    %cst = arith.constant dense<0.000000e+00> : vector<8x256xf32>
    %3 = tpu.matmul %1, %2, %cst {dimension_numbers = #tpu.dot_dimension_numbers<[1], [0], [0], [1], [0, 0, 1, 1], [], []>} : vector<8x32xbf16>, vector<32x256xbf16>, vector<8x256xf32> -> vector<8x256xf32>
    %c0_3 = arith.constant 0 : index
    %c0_4 = arith.constant 0 : index
    %4 = vector.load %arg4[%c0_3, %c0_4] : memref<1x256xf32, #tpu.memory_space<vmem>>, vector<1x256xf32>
    %5 = vector.broadcast %4 : vector<1x256xf32> to vector<8x256xf32>
    %6 = arith.addf %3, %5 : vector<8x256xf32>
    %c0_5 = arith.constant 0 : index
    %c0_6 = arith.constant 0 : index
    %7 = vector.load %arg2[%c0_5, %c0_6] : memref<8x128xbf16, #tpu.memory_space<vmem>>, vector<8x128xbf16>
    %8 = vector.extract_strided_slice %7 {offsets = [0, 0], sizes = [8, 1], strides = [1, 1]} : vector<8x128xbf16> to vector<8x1xbf16>
    %9 = arith.extf %8 : vector<8x1xbf16> to vector<8x1xf32>
    %10 = vector.extract_strided_slice %6 {offsets = [0, 128], sizes = [8, 128], strides = [1, 1]} : vector<8x256xf32> to vector<8x128xf32>
    %11 = vector.broadcast %9 : vector<8x1xf32> to vector<8x128xf32>
    %12 = arith.mulf %10, %11 : vector<8x128xf32>
    %c0_7 = arith.constant 0 : index
    %c0_8 = arith.constant 0 : index
    %13 = vector.load %arg8[%c0_7, %c0_8] : memref<8x128xf32, #tpu.memory_space<vmem>>, vector<8x128xf32>
    tpu.vector_store %arg8[%c0_7, %c0_8], %12 {strides = array<i32>} : memref<8x128xf32, #tpu.memory_space<vmem>>, vector<8x128xf32>,
    %14 = vector.extract_strided_slice %6 {offsets = [0, 0], sizes = [8, 128], strides = [1, 1]} : vector<8x256xf32> to vector<8x128xf32>
    %15 = arith.mulf %14, %14 : vector<8x128xf32>
    %16 = arith.mulf %14, %15 : vector<8x128xf32>
    %cst_9 = arith.constant 4.471500e-02 : f32
    %17 = vector.broadcast %cst_9 : f32 to vector<8x128xf32>
    %18 = arith.mulf %17, %16 : vector<8x128xf32>
    %19 = arith.addf %14, %18 : vector<8x128xf32>
    %cst_10 = arith.constant 0.797884583 : f32
    %20 = vector.broadcast %cst_10 : f32 to vector<8x128xf32>
    %21 = arith.mulf %20, %19 : vector<8x128xf32>
    %22 = math.tanh %21 : vector<8x128xf32>
    %cst_11 = arith.constant 1.000000e+00 : f32
    %23 = vector.broadcast %cst_11 : f32 to vector<8x128xf32>
    %24 = arith.addf %23, %22 : vector<8x128xf32>
    %cst_12 = arith.constant 5.000000e-01 : f32
    %25 = vector.broadcast %cst_12 : f32 to vector<8x128xf32>
    %26 = arith.mulf %25, %24 : vector<8x128xf32>
    %27 = arith.mulf %14, %26 : vector<8x128xf32>
    %28 = arith.truncf %27 : vector<8x128xf32> to vector<8x128xbf16>
    %c0_13 = arith.constant 0 : index
    %c0_14 = arith.constant 0 : index
    %29 = vector.load %arg5[%c0_13, %c0_14] : memref<128x128xbf16, #tpu.memory_space<vmem>>, vector<128x128xbf16>
    %cst_15 = arith.constant dense<0.000000e+00> : vector<8x128xf32>
    %30 = tpu.matmul %28, %29, %cst_15 {dimension_numbers = #tpu.dot_dimension_numbers<[1], [0], [0], [1], [0, 0, 1, 1], [], []>} : vector<8x128xbf16>, vector<128x128xbf16>, vector<8x128xf32> -> vector<8x128xf32>
    %c0_16 = arith.constant 0 : index
    %c0_17 = arith.constant 0 : index
    %31 = vector.load %arg6[%c0_16, %c0_17] : memref<1x128xf32, #tpu.memory_space<vmem>>, vector<1x128xf32>
    %32 = vector.broadcast %31 : vector<1x128xf32> to vector<8x128xf32>
    %33 = arith.addf %30, %32 : vector<8x128xf32>
    %c0_18 = arith.constant 0 : index
    %c0_19 = arith.constant 0 : index
    %34 = vector.load %arg7[%c0_18, %c0_19] : memref<8x128xf32, #tpu.memory_space<vmem>>, vector<8x128xf32>
    tpu.vector_store %arg7[%c0_18, %c0_19], %33 {strides = array<i32>} : memref<8x128xf32, #tpu.memory_space<vmem>>, vector<8x128xf32>,
    return
  }
  func.func @transform_0(%arg0: i32) -> (i32, i32) {
    %c0_i32 = arith.constant 0 : i32
    %c0_i32_0 = arith.constant 0 : i32
    return %arg0, %c0_i32 : i32, i32
  }
  func.func @transform_1(%arg0: i32) -> (i32, i32) {
    %c0_i32 = arith.constant 0 : i32
    %c0_i32_0 = arith.constant 0 : i32
    return %arg0, %c0_i32 : i32, i32
  }
  func.func @transform_2(%arg0: i32) -> (i32, i32) {
    %c0_i32 = arith.constant 0 : i32
    %c0_i32_0 = arith.constant 0 : i32
    %c0_i32_1 = arith.constant 0 : i32
    return %c0_i32, %c0_i32_0 : i32, i32
  }
  func.func @transform_3(%arg0: i32) -> (i32, i32) {
    %c0_i32 = arith.constant 0 : i32
    %c0_i32_0 = arith.constant 0 : i32
    %c0_i32_1 = arith.constant 0 : i32
    return %c0_i32, %c0_i32_0 : i32, i32
  }
  func.func @transform_4(%arg0: i32) -> (i32, i32) {
    %c0_i32 = arith.constant 0 : i32
    %c0_i32_0 = arith.constant 0 : i32
    %c0_i32_1 = arith.constant 0 : i32
    return %c0_i32, %c0_i32_0 : i32, i32
  }
  func.func @transform_5(%arg0: i32) -> (i32, i32) {
    %c0_i32 = arith.constant 0 : i32
    %c0_i32_0 = arith.constant 0 : i32
    %c0_i32_1 = arith.constant 0 : i32
    return %c0_i32, %c0_i32_0 : i32, i32
  }
  func.func @transform_6(%arg0: i32) -> (i32, i32) {
    %c0_i32 = arith.constant 0 : i32
    %c0_i32_0 = arith.constant 0 : i32
    return %arg0, %c0_i32 : i32, i32
  }
  func.func @transform_7(%arg0: i32) -> (i32, i32) {
    %c0_i32 = arith.constant 0 : i32
    %c0_i32_0 = arith.constant 0 : i32
    return %arg0, %c0_i32 : i32, i32
  }
}

</mosaic_0001>

<bundles_post_ra>
// kernel: tpu_custom_call.1
= control target key start
LH: loop header
LB: loop body
LE: loop exit
PB: predicated region body
PF: predicated region fallthrough
CT: control target
= control target key end

     0   :  { %s1461_s0 = inlined_call_operand.hbm [shape: f32[16,32], index: 0, kind: input, shape index: {}]   ;;  %s1462_s1 = inlined_call_operand.hbm [shape: bf16[16,128], index: 1, kind: input, shape index: {}]   ;;  %s1463_s2 = inlined_call_operand.hbm [shape: bf16[32,256], index: 2, kind: input, shape index: {}]   ;;  %s1464_s3 = inlined_call_operand.vmem [shape: f32[1,256], index: 3, kind: input, shape index: {}]   ;;  %s1465_s4 = inlined_call_operand.hbm [shape: bf16[128,128], index: 4, kind: input, shape index: {}]   ;;  %s1466_s5 = inlined_call_operand.vmem [shape: f32[1,128], index: 5, kind: input, shape index: {}]   ;;  %s1467_s6 = inlined_call_operand.hbm [shape: f32[16,128], index: 6, kind: output, shape index: {0}]   ;;  %s1468_s7 = inlined_call_operand.hbm [shape: f32[16,128], index: 7, kind: output, shape index: {1}]  }
   0x1   :  { %1473 = sst [smem:[#allocation19_spill]] %s1461_s0 }
   0x2   :  { %1474 = sst [smem:[#allocation20_spill]] %s1463_s2 }
   0x3   :  { %1475 = sst [smem:[#allocation21_spill]] %s1465_s4 }
   0x4   :  { %13 = vsyncpa [#allocation3], 0 }
   0x5   :  { %15 = vsyncpa [#allocation3 + $0x1], 0 }
   0x6   :  { %16 = vsyncpa [#allocation6], 0 }
   0x7   :  { %18 = vsyncpa [#allocation6 + $0x1], 0 }
   0x8   :  { %19 = vsyncpa [#allocation9], 0 }
   0x9   :  { %20 = vsyncpa [#allocation4], 0 }
   0xa   :  { %22 = vsyncpa [#allocation4 + $0x1], 0 }
   0xb   :  { %23 = vsyncpa [#allocation12], 0 }
   0xc   :  { %25 = vsyncpa [#allocation12 + $0x1], 0  ;;  %s1197_s24 = smov 0   ;;  %s1199_s25 = smov 0  }
   0xd   :  { %s1201_s26 = smov 0   ;;  %s1203_s27 = smov 0  }
   0xe LB: > { %s1218_s28 = sadd.s32 4294967295, %s1142_s27   ;;  %s762_s29 = sadd.s32 4294967294, %s1142_s27   ;;  %s1142_s27 = sphi %s1203_s27, %s1500_s27   ;;  %s1138_s26 = sphi %s1201_s26, %s1499_s26   ;;  %s1134_s25 = sphi %s1199_s25, %s1498_s25   ;;  %s1130_s24 = sphi %s1197_s24, %s1497_s24  }
   0xf   : > { %p51_p0 = scmp.ne.s32.totalorder %s1134_s25, %s1130_s24  ;;  %p1469_p1 = scmp.eq.s32.totalorder %s1218_s28, 0 }
  0x10   : > { %p191_p3 = scmp.eq.s32.totalorder %s762_s29, 1  ;;  %p763_p5 = scmp.ge.s32.totalorder %s1142_s27, 1 }
  0x11   : > { %p1227_p4 = por %p1469_p1, %p51_p0  ;;  %p224_p7 = scmp.lt.s32.totalorder %s1142_s27, 3 }
  0x12   : > { %p1232_p6 = por %p191_p3, %p51_p0  ;;  %s1144_s10 = smov [#allocation7]  }
  0x13   : > { %s1476_s30 = scalar_select %p1227_p4, 1, 0 }
  0x14   : > { %s1477_s8 = scalar_select %p1232_p6, 1, 0 }
  0x15   : > { %p1237_p8 = pnand %p763_p5, %p224_p7  ;;  %s236_s11 = sshll.u32 %s1144_s10, 4  ;;  %s237_s11 = int_to_ptr.vmem [resolvable:$true] %s236_s11 }
  0x16   : > { %s1145_s13 = smov [#allocation8]   ;;  %s939_s15 = scalar_lea.vmem %s237_s11, 512 }
  0x17   : > { %s1478_s9 = scalar_select %p1237_p8, 1, 0 }
  0x18   : > { %p843_p9 = pneg %p1237_p8  ;;  %s252_s14 = sshll.u32 %s1145_s13, 4  ;;  %s253_s14 = int_to_ptr.vmem [resolvable:$true] %s252_s14 }
  0x19   : > { %p940_p13 = scmp.ne.s32.totalorder %s237_s11, %s939_s15  ;;  %p947_p5 = scmp.lt.s32.totalorder %s237_s11, %s237_s11 }
  0x1a   : > { %p1246_p11 = pnand %p843_p9, %p1469_p1  ;;  %p948_p7 = scmp.lt.s32.totalorder %s939_s15, %s939_s15 }
  0x1c   : > { %p930_p12 = pneg %p1246_p11  ;;  %p949_p10 = por %p948_p7, %p947_p5 }
  0x1e   : > { %p942_p0 = pnand %p940_p13, %p930_p12 }
  0x20   : > { %p943_p3 = pneg %p942_p0 }
  0x22   : > { %p950_p9 = pnand %p949_p10, %p943_p3 }
  0x24   : > { %953 = shalt.err (!%p950_p9)
}
  0x25   : > { %s1146_s16 = smov 128   ;;  %s1147_s17 = smov 8  }
  0x26   : > { %s1480_s2 = sld [smem:[#allocation20_spill]]  ;;  %s965_s20 = scalar_lea.vmem %s253_s14, 1024 }
  0x27   : > { %p966_p1 = scmp.ne.s32.totalorder %s253_s14, %s965_s20  ;;  %p973_p2 = scmp.lt.s32.totalorder %s253_s14, %s253_s14 }
  0x28   : > { %p974_p6 = scmp.lt.s32.totalorder %s965_s20, %s965_s20 }
  0x29   : > { %p968_p13 = pnand %p966_p1, %p930_p12 }
  0x2a   : > { %p975_p5 = por %p974_p6, %p973_p2 }
  0x2b   : > { %p969_p0 = pneg %p968_p13 }
  0x2c   : > { %846 = dma.hbm_to_vmem [thread:$0]  (!%p1246_p11), %s1480_s2, 512, %s237_s11, [#allocation6], %s1146_s16, %s1146_s16, %s1147_s17  }
  0x2d   : > { %p976_p10 = pnand %p975_p5, %p969_p0 }
  0x2f   : > { %979 = shalt.err (!%p976_p10)
}
  0x30   : > { %s1148_s21 = smov 64   ;;  %s1149_s22 = smov 4  }
  0x31   : > { %s1481_s4 = sld [smem:[#allocation21_spill]]  ;;  %s1269_s10 = sadd.s32 1, %s1142_s27  }
  0x32   : > { %s35_s11 = ssub.s32 %s1142_s27, %s1269_s10  ;;  %s38_s13 = sadd.s32 1, %s1138_s26 }
  0x33   : > { %p36_p1 = scmp.eq.s32.totalorder %s35_s11, 0  ;;  %p45_p2 = scmp.ne.s32.totalorder %s1138_s26, %s1134_s25 }
  0x34   : > { %p46_p6 = scmp.eq.s32.totalorder %s1142_s27, 0  ;;  %p1482_p3 = scmp.eq.s32.totalorder %s1218_s28, 1 }
  0x35   : > { %s1278_s15 = scalar_select %p36_p1, %s1138_s26, %s38_s13  }
  0x36   : > { %p47_p12 = por %p46_p6, %p45_p2  ;;  %p1282_p7 = por %p1482_p3, %p45_p2 }
  0x37   : > { %849 = dma.hbm_to_vmem [thread:$0]  (!%p1246_p11), %s1481_s4, 1024, %s253_s14, [#allocation9], %s1148_s21, %s1148_s21, %s1149_s22  }
  0x38   : > { %s1483_s16 = scalar_select %p1282_p7, 1, 0 }
  0x39   : > { %p866_p9 = scmp.lt.s32.totalorder %s1142_s27, 2  ;;  %s1288_s12 = sand.u32 1, %s1138_s26  }
  0x3a   : > { %s767_s14 = sshll.u32 %s1288_s12, 3  ;;  %s768_s17 = sshll.u32 %s1142_s27, 7 }
  0x3b   : > { %s1484_s0 = sld [smem:[#allocation19_spill]]  ;;  %s273_s21 = scalar_lea.vmem [#allocation2], %s767_s14 }
  0x3c   : > { %s280_s22 = sshll.u32 %s273_s21, 4  ;;  %p1299_p11 = pnand %p866_p9, %p47_p12  ;;  %s1297_s22 = int_to_ptr.vmem [resolvable:$true] %s280_s22 }
  0x3d   : > { %s270_s13 = scalar_lea.sflag [#allocation3], %s1288_s12 }
  0x3e   : > { %p982_p0 = pneg %p1299_p11 }
  0x41   : > { %s1295_s20 = scalar_lea.hbm %s1484_s0, %s768_s17  ;;  %s985_s18 = scalar_lea.hbm %s1484_s0, 256 }
  0x42   : > { %s980_s2 = scalar_lea.hbm %s1295_s20, 128  ;;  %p986_p1 = scmp.lt.s32.totalorder %s1295_s20, %s1484_s0 }
  0x43   : > { %p981_p13 = scmp.ne.s32.totalorder %s1295_s20, %s980_s2  ;;  %p987_p2 = scmp.lt.s32.totalorder %s985_s18, %s980_s2 }
  0x45   : > { %p983_p5 = pnand %p982_p0, %p981_p13  ;;  %p988_p6 = por %p987_p2, %p986_p1 }
  0x47   : > { %p984_p10 = pneg %p983_p5 }
  0x49   : > { %p989_p12 = pnand %p988_p6, %p984_p10 }
  0x4b   : > { %992 = shalt.err (!%p989_p12)
}
  0x4c   : > { %s993_s29 = scalar_lea.vmem %s1297_s22, 128  ;;  %s1150_s14 = smov [#allocation2]  }
  0x4d   : > { %p994_p3 = scmp.ne.s32.totalorder %s1297_s22, %s993_s29  ;;  %s998_s17 = sshll.u32 %s1150_s14, 4  ;;  %s999_s17 = int_to_ptr.vmem [resolvable:$false] %s998_s17 }
  0x4e   : > { %s1000_s11 = scalar_lea.vmem %s999_s17, 256  ;;  %p1001_p5 = scmp.lt.s32.totalorder %s1297_s22, %s999_s17 }
  0x4f   : > { %p996_p9 = pnand %p994_p3, %p982_p0  ;;  %p1002_p7 = scmp.lt.s32.totalorder %s1000_s11, %s993_s29 }
  0x51   : > { %p997_p13 = pneg %p996_p9  ;;  %p1003_p4 = por %p1002_p7, %p1001_p5 }
  0x53   : > { %p1004_p1 = pnand %p1003_p4, %p997_p13 }
  0x55   : > { %1007 = shalt.err (!%p1004_p1)
}
  0x56   : > { %853 = dma.hbm_to_vmem [thread:$0]  (!%p1299_p11), %s1295_s20, 128, %s1297_s22, %s270_s13  }
  0x57   : > { %s770_s2 = sshll.u32 %s1142_s27, 6  ;;  %s1486_s14 = sshll.u32 %s1288_s12, 2 }
  0x58   : > { %s1334_s21 = scalar_lea.hbm %s1462_s1, %s770_s2  ;;  %s291_s29 = scalar_lea.vmem [#allocation5], %s1486_s14 }
  0x59   : > { %s298_s11 = sshll.u32 %s291_s29, 4  ;;  %s1487_s17 = sand.u32 1, %s1142_s27   ;;  %s299_s11 = int_to_ptr.vmem [resolvable:$true] %s298_s11 }
  0x5a   : > { %s288_s0 = scalar_lea.sflag [#allocation6], %s1487_s17  ;;  %s1008_s4 = scalar_lea.hbm %s1334_s21, 64 }
  0x5b   : > { %p1009_p4 = scmp.ne.s32.totalorder %s1334_s21, %s1008_s4  ;;  %s1013_s13 = scalar_lea.hbm %s1462_s1, 128 }
  0x5c   : > { %p1014_p2 = scmp.lt.s32.totalorder %s1334_s21, %s1462_s1  ;;  %p1015_p6 = scmp.lt.s32.totalorder %s1013_s13, %s1008_s4 }
  0x5d   : > { %p1011_p7 = pnand %p1009_p4, %p982_p0 }
  0x5e   : > { %p1016_p12 = por %p1015_p6, %p1014_p2 }
  0x5f   : > { %p1012_p10 = pneg %p1011_p7 }
  0x61   : > { %p1017_p3 = pnand %p1016_p12, %p1012_p10 }
  0x63   : > { %1020 = shalt.err (!%p1017_p3)
}
  0x64   : > { %s1021_s18 = scalar_lea.vmem %s299_s11, 64  ;;  %s1151_s19 = smov [#allocation5]  }
  0x65   : > { %p1022_p9 = scmp.ne.s32.totalorder %s299_s11, %s1021_s18  ;;  %s1026_s14 = sshll.u32 %s1151_s19, 4  ;;  %s1027_s14 = int_to_ptr.vmem [resolvable:$false] %s1026_s14 }
  0x66   : > { %s1028_s29 = scalar_lea.vmem %s1027_s14, 128  ;;  %p1029_p1 = scmp.lt.s32.totalorder %s299_s11, %s1027_s14 }
  0x67   : > { %p1024_p13 = pnand %p1022_p9, %p982_p0  ;;  %p1030_p4 = scmp.lt.s32.totalorder %s1028_s29, %s1021_s18 }
  0x69   : > { %p1025_p5 = pneg %p1024_p13  ;;  %p1031_p7 = por %p1030_p4, %p1029_p1 }
  0x6b   : > { %p1032_p8 = pnand %p1031_p7, %p1025_p5 }
  0x6d   : > { %1035 = shalt.err (!%p1032_p8)
}
  0x6e   : > { %856 = dma.hbm_to_vmem [thread:$0]  (!%p1299_p11), %s1334_s21, 64, %s299_s11, %s288_s0  }
  0x6f   : > { %p1488_p10 = scmp.ne.s32.totalorder %s1478_s9, 0 }
  0x70   : > { %s1361_s4 = sand.u32 (!%p1488_p10), 1, %s1134_s25   ;;  %p1489_p0 = scmp.ne.s32.totalorder (!%p1488_p10), %s1476_s30, 0 }
  0x71   : > { %307 = sbr.rel (%p1488_p10) target bundleno = 574 (0x23e), region = 44  ;;  %s1364_s17 = sshll.u32 (!%p1488_p10), %s1361_s4, 3 }
  0x72   : > { %s310_s20 = scalar_lea.sflag (!%p1488_p10), [#allocation3], %s1361_s4  ;;  %s313_s22 = scalar_lea.vmem (!%p1488_p10), [#allocation2], %s1364_s17 }
  0x76   : > { %1105 = dma.done.wait (%p1489_p0), %s310_s20, 128  }
  0x77   : > { %1107 = vsyncadd (%p1489_p0), %s310_s20, 4294967168  ;;  %s318_s0 = sand.u32 1, %s1218_s28   ;;  %s773_s9 = sshll.u32 %s1361_s4, 2 }
  0x78   : > { %s319_s23 = scalar_lea.sflag [#allocation6], %s318_s0  ;;  %s322_s21 = scalar_lea.vmem [#allocation5], %s773_s9 }
  0x79   : > { %1109 = dma.done.wait (%p1489_p0), %s319_s23, 64  }
  0x7a   : > { %1111 = vsyncadd (%p1489_p0), %s319_s23, 4294967232  ;;  %p1490_p8 = scmp.eq.s32.totalorder %s1218_s28, 0 }
  0x7c   : > { %1113 = dma.done.wait (%p1490_p8), [#allocation6], 512   ;;  %p1491_p11 = pmov %p1490_p8 }
  0x7d   : > { %p1492_p2 = pmov %p1490_p8 }
  0x7e   : > { %1115 = vsyncadd (%p1491_p11), [#allocation6], 4294966784 }
  0x7f   : > { %1117 = dma.done.wait (%p1492_p2), [#allocation9], 1024   ;;  %p1493_p6 = pmov %p1492_p2 }
  0x80   : > { %v1152_v0 = vmov 0   ;;  %v912_v1 = vld [vmem:[#allocation7 + $0x14] ss:$8 sps:$4 sm:$0xff]   ;;  %v914_v2 = vld [vmem:[#allocation7 + $0x10] ss:$8 sps:$4 sm:$0xff]   ;;  %vm410_vm0 = vcmask 261120   ;;  %v380_v18 = vlaneseq }
  0x81   : > { %1119 = vsyncadd (%p1493_p6), [#allocation9], 4294966272  ;;  %446 = vmatprep.mubr.bf16.mxu0 %v1152_v0  ;;  %911 = vset.pattern.permute.xlu0 %v1152_v0  ;;  %v915_v3 = vld [vmem:[#allocation7 + $0x4] ss:$8 sps:$4 sm:$0xff]   ;;  %v917_v4 = vld [vmem:[#allocation7] ss:$8 sps:$4 sm:$0xff]  }
  0x82   : > { %426 = vmatprep.subr.bf16.mxu0 %v912_v1  ;;  %v372_v5 = vld [vmem:[%s313_s22] sm:$0xff]  ;;  %v455_v6 = vld [vmem:[%s322_s21] sm:$0xf]  ;;  %v1153_v10 = vmov 0.0   ;;  %v921_v13 = vld [vmem:[#allocation8 + $0x20] sm:$0xff]   ;;  %vm1154_vm1 = vmmov 0  }
  0x83   : > { %427 = vmatpush1.bf16.msra.mxu0 %v914_v2  ;;  %v456_v7 = vunpack.c.l.bf16 %v455_v6  ;;  %v373_v8 = vpack.c.bf16 %v372_v5, %v372_v5  ;;  %v918_v9 = vld [vmem:[#allocation8 + $0x38] sm:$0xff]   ;;  %807 = vmatprep.subr.bf16.mxu1 %v1153_v10  ;;  %v919_v11 = vld [vmem:[#allocation8 + $0x30] sm:$0xff]   ;;  %v920_v12 = vld [vmem:[#allocation8 + $0x28] sm:$0xff]   ;;  %v381_v19 = vshrl.u32 %v380_v18, 7  ;;  %s370_s13 = scalar_lea.vmem [#allocation11], %s1364_s17  ;;  %s794_s2 = sshll.u32 %s1218_s28, 7 }
  0x84   : > { %428 = vmatprep.subr.bf16.mxu0 %v915_v3  ;;  %808 = vmatpush3.bf16.msra.mxu1 %v918_v9  ;;  %v922_v14 = vld [vmem:[#allocation8 + $0x18] sm:$0xff]   ;;  %v923_v15 = vld [vmem:[#allocation8 + $0x10] sm:$0xff]   ;;  %v924_v16 = vld [vmem:[#allocation8 + $0x8] sm:$0xff]   ;;  %s616_s19 = scalar_lea.hbm %s1468_s7, %s794_s2  ;;  %s618_s14 = sshll.u32 %s370_s13, 4  ;;  %s619_s14 = int_to_ptr.vmem [resolvable:$true] %s618_s14 }
  0x85   : > { %459 = vperm.xlu0 %911, %v456_v7   ;;  %809 = vmatprep.subr.bf16.mxu1 %v1153_v10  ;;  %v925_v17 = vld [vmem:[#allocation8] sm:$0xff]   ;;  %v382_v20 = vsub.s32 0, %v381_v19  ;;  %v378_v21 = vld [vmem:[%s1464_s3] sm:$0x3]  ;;  %v386_v22 = vsub.s32 1, %v381_v19  ;;  %s592_s29 = scalar_lea.sflag [#allocation12], %s1361_s4 }
  0x86   : > { %823 = vmatprep.mubr.msk.bf16.mxu1 %vm1154_vm1, %v1153_v10  ;;  %s1036_s20 = scalar_lea.vmem %s619_s14, 128  ;;  %p1494_p3 = scmp.ne.s32.totalorder %s1483_s16, 0 }
  0x87   : > { %429 = vmatpush1.bf16.msra.mxu0 %v917_v4  ;;  %v383_v23 = vrot.slane %v378_v21, %v382_v20  ;;  %v387_v24 = vrot.slane %v378_v21, %v386_v22  ;;  %p1037_p12 = scmp.ne.s32.totalorder %s619_s14, %s1036_s20  ;;  %s1155_s22 = smov [#allocation11]  }
  0x88   : > { %810 = vmatpush3.bf16.msra.mxu1 %v919_v11  ;;  %s1040_s0 = sshll.u32 %s1155_s22, 4  ;;  %s1041_s0 = int_to_ptr.vmem [resolvable:$false] %s1040_s0 }
  0x89   : > { %811 = vmatprep.subr.bf16.mxu1 %v1153_v10  ;;  %p1038_p9 = pnand %p1037_p12, %p1494_p3  ;;  %s1042_s9 = scalar_lea.vmem %s1041_s0, 256 }
  0x8a   : > { %782 = vmatmul.mubr.msk.bf16.vlgmr.msra.gmra.mxu0 %vm410_vm0, %v373_v8  ;;  %p1043_p5 = scmp.lt.s32.totalorder %s619_s14, %s1041_s0  ;;  %p1044_p1 = scmp.lt.s32.totalorder %s1042_s9, %s1036_s20 }
  0x8b   : > { %p1039_p13 = pneg %p1038_p9 }
  0x8c   : > { %812 = vmatpush3.bf16.msra.mxu1 %v920_v12  ;;  %p1045_p4 = por %p1044_p1, %p1043_p5 }
  0x8d   : > { %813 = vmatprep.subr.bf16.mxu1 %v1153_v10 }
  0x8e   : > { %p1046_p7 = pnand %p1045_p4, %p1039_p13 }
  0x90   : > { %814 = vmatpush3.bf16.msra.mxu1 %v921_v13 }
  0x91   : > { %815 = vmatprep.subr.bf16.mxu1 %v1153_v10 }
  0x94   : > { %816 = vmatpush3.bf16.msra.mxu1 %v922_v14 }
  0x95   : > { %817 = vmatprep.subr.bf16.mxu1 %v1153_v10 }
  0x98   : > { %818 = vmatpush3.bf16.msra.mxu1 %v923_v15 }
  0x99   : > { %819 = vmatprep.subr.bf16.mxu1 %v1153_v10 }
  0x9c   : > { %820 = vmatpush3.bf16.msra.mxu1 %v924_v16 }
  0x9d   : > { %821 = vmatprep.subr.bf16.mxu1 %v1153_v10 }
  0xa0   : > { %822 = vmatpush3.bf16.msra.mxu1 %v925_v17 }
 0x100   : > { %v460_v28 = vpop.permute.xlu0 %459 }
 0x14a   : > { %v448_v25 = vpop.f32.mrf.mxu0 }
 0x14b   : > { %v449_v26 = vadd.f32 %v448_v25, %v383_v23 }
 0x14c   : > { %v450_v27 = vpop.f32.mrf.mxu0 }
 0x14d   : > { %v464_v29 = vmul.f32 %v449_v26, %v449_v26  ;;  %v451_v30 = vadd.f32 %v450_v27, %v387_v24 }
 0x14e   : > { %v452_v31 = vpop.f32.mrf.mxu0 }
 0x14f   : > { %v465_v32 = vmul.f32 %v464_v29, %v449_v26  ;;  %v462_v33 = vmul.f32 %v460_v28, %v451_v30 }
 0x150   : > { %v453_v34 = vpop.f32.mrf.mxu0 }
 0x151   : > { %v466_v35 = vmul.f32 0.044715, %v465_v32  ;;  %463 = vst [vmem:[%s370_s13] sm:$0xff] %v462_v33 }
 0x153   : > { %v467_v36 = vadd.f32 %v466_v35, %v449_v26 }
 0x155   : > { %v468_v37 = vmul.f32 0.7978846, %v467_v36 }
 0x157   : > { %926 = vtanh.f32 %v468_v37 }
 0x164   : > { %v927_v38 = vpop.eup %926 }
 0x165   : > { %v470_v39 = vadd.f32 1.0, %v927_v38 }
 0x167   : > { %v471_v40 = vmul.f32 0.5, %v470_v39 }
 0x169   : > { %v472_v41 = vmul.f32 %v471_v40, %v449_v26 }
 0x16b   : > { %v473_v42 = vpack.c.bf16 %v472_v41, %v472_v41 }
 0x16d   : > { %824 = vmatmul.mubr.bf16.vlgmr.msra.gmra.mxu1 %v473_v42 }
 0x16e   : > { %1049 = shalt.err (!%p1046_p7)
}
 0x16f   : > { %s1050_s23 = scalar_lea.hbm %s616_s19, 128  ;;  %s1054_s11 = scalar_lea.hbm %s1468_s7, 256 }
 0x170   : > { %p1051_p10 = scmp.ne.s32.totalorder %s616_s19, %s1050_s23  ;;  %p1055_p11 = scmp.lt.s32.totalorder %s616_s19, %s1468_s7 }
 0x171   : > { %p1056_p2 = scmp.lt.s32.totalorder %s1054_s11, %s1050_s23 }
 0x172   : > { %p1052_p0 = pnand %p1051_p10, %p1494_p3 }
 0x173   : > { %p1057_p6 = por %p1056_p2, %p1055_p11 }
 0x174   : > { %p1053_p8 = pneg %p1052_p0 }
 0x176   : > { %p1058_p12 = pnand %p1057_p6, %p1053_p8 }
 0x178   : > { %1061 = shalt.err (!%p1058_p12)
}
 0x179   : > { %840 = dma.vmem_to_hbm [thread:$0]  (%p1494_p3), %s619_s14, 128, %s616_s19, %s592_s29   ;;  %v783_v43 = vld [vmem:[%s1466_s5] ss:$0 sm:$0xff] }
 0x17a   : > { %s363_s22 = scalar_lea.vmem [#allocation10], %s1364_s17  ;;  %s1418_s21 = scalar_lea.hbm %s1467_s6, %s794_s2 }
 0x17b   : > { %s605_s0 = sshll.u32 %s363_s22, 4  ;;  %s587_s19 = scalar_lea.sflag [#allocation4], %s1361_s4  ;;  %s1420_s0 = int_to_ptr.vmem [resolvable:$true] %s605_s0 }
 0x17c   : > { %s1062_s14 = scalar_lea.vmem %s1420_s0, 128  ;;  %s1156_s28 = smov [#allocation10]  }
 0x17d   : > { %p1063_p9 = scmp.ne.s32.totalorder %s1420_s0, %s1062_s14  ;;  %s1066_s17 = sshll.u32 %s1156_s28, 4  ;;  %s1067_s17 = int_to_ptr.vmem [resolvable:$false] %s1066_s17 }
 0x17e   : > { %s1068_s29 = scalar_lea.vmem %s1067_s17, 256  ;;  %p1069_p1 = scmp.lt.s32.totalorder %s1420_s0, %s1067_s17 }
 0x17f   : > { %p1064_p13 = pnand %p1063_p9, %p1494_p3  ;;  %p1070_p4 = scmp.lt.s32.totalorder %s1068_s29, %s1062_s14 }
 0x181   : > { %p1065_p5 = pneg %p1064_p13  ;;  %p1071_p7 = por %p1070_p4, %p1069_p1 }
 0x183   : > { %p1072_p10 = pnand %p1071_p7, %p1065_p5 }
 0x22d   : > { %v579_v44 = vpop.f32.mrf.mxu1 }
 0x22e   : > { %v580_v45 = vadd.f32 %v783_v43, %v579_v44 }
 0x22f   : > { %v825_v46 = vpop.f32.mrf.mxu1 }
 0x230   : > { %585 = vst [vmem:[%s363_s22] sm:$0xff] %v580_v45 }
 0x231   : > { %v582_v47 = vpop.f32.mrf.mxu1 }
 0x232   : > { %1075 = shalt.err (!%p1072_p10)
}
 0x233   : > { %s1076_s2 = scalar_lea.hbm %s1418_s21, 128  ;;  %s1080_s11 = scalar_lea.hbm %s1467_s6, 256 }
 0x234   : > { %p1077_p0 = scmp.ne.s32.totalorder %s1418_s21, %s1076_s2  ;;  %p1081_p2 = scmp.lt.s32.totalorder %s1418_s21, %s1467_s6 }
 0x235   : > { %p1082_p6 = scmp.lt.s32.totalorder %s1080_s11, %s1076_s2 }
 0x236   : > { %p1078_p8 = pnand %p1077_p0, %p1494_p3 }
 0x237   : > { %p1083_p12 = por %p1082_p6, %p1081_p2 }
 0x238   : > { %p1079_p11 = pneg %p1078_p8 }
 0x23a   : > { %p1084_p9 = pnand %p1083_p12, %p1079_p11 }
 0x23c   : > { %1087 = shalt.err (!%p1084_p9)
}
 0x23d   : > { %839 = dma.vmem_to_hbm [thread:$0]  (%p1494_p3), %s1420_s0, 128, %s1418_s21, %s587_s19   ;;  %v826_v48 = vpop.f32.mrf.mxu1 }
 0x23e PF: > { %s630_s18 = sand.u32 1, %s1130_s24   ;;  %p1495_p13 = scmp.ne.s32.totalorder %s1477_s8, 0 }
 0x23f   : > { %p1496_p5 = scmp.ge.s32.totalorder %s1142_s27, 2  ;;  %s631_s20 = scalar_lea.sflag [#allocation4], %s630_s18 }
 0x241   : > { %p858_p1 = pnand %p1496_p5, %p1495_p13 }
 0x243   : > { %p859_p4 = pneg %p858_p1 }
 0x245   : > { %1121 = dma.done.wait (%p859_p4), %s631_s20, 128  }
 0x246   : > { %1123 = vsyncadd (%p859_p4), %s631_s20, 4294967168  ;;  %s640_s22 = scalar_lea.sflag [#allocation12], %s630_s18 }
 0x247   : > { %1125 = dma.done.wait (%p859_p4), %s640_s22, 128  }
 0x248   : > { %1127 = vsyncadd (%p859_p4), %s640_s22, 4294967168  ;;  %p28_p3 = scmp.ge.s32.totalorder %s1269_s10, 4   ;;  %s1497_s24 = smov %s1134_s25 }
 0x249   : > { %s1498_s25 = smov %s1138_s26  ;;  %s1499_s26 = smov %s1278_s15 }
 0x24a   : > { %s1500_s27 = smov %s1269_s10  ;;  %30 = sbr.rel (!%p28_p3) target bundleno = 14 (0xe), region = 127 }
 0x24f   :  { %645 = vsyncpa [#allocation3], 1 }
 0x250   :  { %647 = vsyncpa [#allocation3 + $0x1], 1 }
 0x251   :  { %648 = vsyncpa [#allocation6], 1 }
 0x252   :  { %650 = vsyncpa [#allocation6 + $0x1], 1 }
 0x253   :  { %651 = vsyncpa [#allocation9], 1 }
 0x254   :  { %652 = vsyncpa [#allocation4], 1 }
 0x255   :  { %654 = vsyncpa [#allocation4 + $0x1], 1 }
 0x256   :  { %655 = vsyncpa [#allocation12], 1 }
 0x257   :  { %657 = vsyncpa [#allocation12 + $0x1], 1 }

</bundles_post_ra>
